<compile_context>
chip_gen: v6e
topology: v6e:2x2x1
jax: 0.10.0
libtpu: 0.0.40
codegen_flags: <defaults>
</compile_context>

<pallas_src>
import numpy as np
import jax
import jax.numpy as jnp
from jax import lax
from jax.experimental import pallas as pl
from jax.experimental.pallas import tpu as pltpu


LANES = 128


# ----------------------------- kernel ---------------------------------------


def make_resblock_kernel(H, L):
    eps = 1e-5

    def kernel(x_ref, m1_ref, m2_ref, p_ref, out_ref, pad_ref, s_ref):
        x = x_ref[...]                                   # (H, L) f32
        pool = p_ref[...]                                # (L, L) f32

        def conv3x3(y, m_ref):
            # Row reflect-pad into the (H+2, L) scratch (column reflection is
            # already folded into the tap matrix M).
            pad_ref[1:H + 1, :] = y
            pad_ref[0:1, :] = y[1:2, :]
            pad_ref[H + 1:H + 2, :] = y[H - 2:H - 1, :]
            # Fused operand: the three row-shifted windows side by side
            # (lane-aligned concat at offsets 0 / L / 2L) -> a single
            # (H, 3L) x (3L, L) single-pass bf16 MXU matmul, f32 accumulation.
            a = jnp.concatenate(
                [pad_ref[0:H, :], pad_ref[1:H + 1, :], pad_ref[2:H + 2, :]],
                axis=1).astype(jnp.bfloat16)
            # Conv bias omitted: it is exactly cancelled by the InstanceNorm
            # (affine=False) that follows each conv (last=False).
            return jnp.dot(a, m_ref[...], preferred_element_type=jnp.float32)

        def instance_norm(y):
            # One-pass stats, kept entirely in f32 (do not move to bf16).
            # Stack [sum_H y ; sum_H y^2] and pool with ONE (2,L)x(L,L) matmul.
            s_ref[0:1, :] = jnp.sum(y, axis=0, keepdims=True)
            s_ref[1:2, :] = jnp.sum(y * y, axis=0, keepdims=True)
            stats = jnp.dot(s_ref[...], pool,
                            preferred_element_type=jnp.float32)   # (2, L)
            mean = stats[0:1, :]
            var = jnp.maximum(stats[1:2, :] - mean * mean, 0.0)
            return (y - mean) * lax.rsqrt(var + eps)

        # conv1 -> IN -> ReLU
        h = jnp.maximum(instance_norm(conv3x3(x, m1_ref)), 0.0)
        # conv2 -> IN -> residual add
        z = instance_norm(conv3x3(h, m2_ref))
        out_ref[...] = x + z

    return kernel


# ----------------------------- parameter packing -----------------------------


def _build_tap_matrices(weight_oihw, n_smp, width, chans):
    """Stacked banded tap matrix (3*L, L), bf16, with the column reflect-pad
    folded in; block-diagonal over the n_smp lane-packed samples."""
    w_np = np.asarray(weight_oihw, dtype=np.float32)      # (Cout, Cin, 3, 3)
    lw = width * chans

    def refl(p):                                          # padded col -> source col
        if p == 0:
            return 1
        if p == width + 1:
            return width - 2
        return p - 1

    m = np.zeros((3, lw, lw), dtype=np.float32)
    for dh in range(3):
        for dw in range(3):
            blk = w_np[:, :, dh, dw].T                    # (Cin, Cout)
            for w in range(width):
                src = refl(w + dw)
                m[dh, src * chans:(src + 1) * chans,
                  w * chans:(w + 1) * chans] += blk

    L = n_smp * lw
    mp = np.zeros((3, L, L), dtype=np.float32)
    for b in range(n_smp):
        mp[:, b * lw:(b + 1) * lw, b * lw:(b + 1) * lw] = m
    # Stack the 3 row-tap matrices along K -> (3L, L); bf16 for single-pass MXU.
    return jnp.asarray(mp.reshape(3 * L, L), dtype=jnp.bfloat16)


def _build_pool_matrix(n_smp, height, width, chans):
    """P[l1, l2] = 1/(H*W) iff lanes l1, l2 share (sample, channel).  f32."""
    L = n_smp * width * chans
    p = np.zeros((L, L), dtype=np.float32)
    inv = 1.0 / float(height * width)
    for b in range(n_smp):
        for c in range(chans):
            idx = b * width * chans + np.arange(width) * chans + c
            p[np.ix_(idx, idx)] = inv
    return jnp.asarray(p)


def precompute_resblock_params(conv1_w, conv2_w, height, width, chans):
    """Host-side weight packing; call ONCE per weight set and reuse."""
    assert height >= 2 and width >= 2, "reflect pad of 1 needs H, W >= 2"
    wc = width * chans
    assert LANES % wc == 0, "W*C must divide 128 for lane-dense packing"
    n_smp = LANES // wc
    return {
        "M1": _build_tap_matrices(conv1_w, n_smp, width, chans),   # (3L, L) bf16
        "M2": _build_tap_matrices(conv2_w, n_smp, width, chans),
        "P": _build_pool_matrix(n_smp, height, width, chans),      # (L, L) f32
        "n_per_group": n_smp,
        "height": height, "width": width, "chans": chans,
    }


# ----------------------------- wrapper ---------------------------------------


def resnet_block_pallas_nhwc(x_nhwc, params):
    """x_nhwc: (N, H, W, C) float32 -> (N, H, W, C) float32."""
    N, H, W, C = x_nhwc.shape
    assert (H, W, C) == (params["height"], params["width"], params["chans"])
    n_smp = params["n_per_group"]
    assert N % n_smp == 0, "batch must be a multiple of 128 // (W*C)"
    G = N // n_smp                                  # 128-lane batch groups
    L = LANES

    # lane-pack: (N,H,W,C) -> (H, N*W*C); lane = b*W*C + w*C + c.
    # Group g occupies lanes [g*128, (g+1)*128).
    x_packed = jnp.transpose(x_nhwc.astype(jnp.float32),
                             (1, 0, 2, 3)).reshape(H, N * W * C)

    out_packed = pl.pallas_call(
        make_resblock_kernel(H, L),
        out_shape=jax.ShapeDtypeStruct((H, N * W * C), jnp.float32),
        grid_spec=pltpu.PrefetchScalarGridSpec(
            num_scalar_prefetch=0,
            grid=(G,),                              # one step per 128-lane group
            in_specs=[
                pl.BlockSpec((H, L), lambda g: (0, g)),       # activations
                pl.BlockSpec((3 * L, L), lambda g: (0, 0)),   # taps 1 (resident)
                pl.BlockSpec((3 * L, L), lambda g: (0, 0)),   # taps 2 (resident)
                pl.BlockSpec((L, L), lambda g: (0, 0)),       # pooling (resident)
            ],
            out_specs=pl.BlockSpec((H, L), lambda g: (0, g)),
            scratch_shapes=[
                pltpu.VMEM((H + 2, L), jnp.float32),          # row-reflect pad
                pltpu.VMEM((2, L), jnp.float32),              # stacked IN stats
            ],
        ),
        compiler_params=pltpu.CompilerParams(
            dimension_semantics=("parallel",)),     # megacore shards groups (v7x)
    )(x_packed, params["M1"], params["M2"], params["P"])

    # unpack: (H, N*W*C) -> (N, H, W, C)
    return out_packed.reshape(H, N, W, C).transpose(1, 0, 2, 3)


# ----------------------------- pure-JAX reference -----------------------------


def resnet_block_ref(x_nchw, W1, b1, W2, b2):
    def conv(x, wt, bs):
        xp = jnp.pad(x, ((0, 0), (0, 0), (1, 1), (1, 1)), mode="reflect")
        y = lax.conv_general_dilated(
            xp, wt, window_strides=(1, 1), padding="VALID",
            dimension_numbers=("NCHW", "OIHW", "NCHW"),
            precision=lax.Precision.HIGHEST)
        return y + bs[None, :, None, None]

    def inorm(y):
        m = jnp.mean(y, axis=(2, 3), keepdims=True)
        v = jnp.mean((y - m) ** 2, axis=(2, 3), keepdims=True)
        return (y - m) / jnp.sqrt(v + 1e-5)

    h = jax.nn.relu(inorm(conv(x_nchw, W1, b1)))
    z = inorm(conv(h, W2, b2))
    return x_nchw + z


# ----------------------------- main ------------------------------------------


if __name__ == "__main__":
    N, C, H, W = 2, 4, 16, 16   # batch=2, dim=4 channels, 16x16 spatial

    key = jax.random.PRNGKey(0)
    kx, k1, k2, k3, k4 = jax.random.split(key, 5)
    x_nchw = jax.random.normal(kx, (N, C, H, W), dtype=jnp.float32)
    W1 = jax.random.normal(k1, (C, C, 3, 3), dtype=jnp.float32) * 0.2   # OIHW
    b1 = jax.random.normal(k2, (C,), dtype=jnp.float32) * 0.2
    b2 = jax.random.normal(k4, (C,), dtype=jnp.float32) * 0.2
    W2 = jax.random.normal(k3, (C, C, 3, 3), dtype=jnp.float32) * 0.2

    # Precompute packed weights ONCE (biases are not needed by the kernel:
    # InstanceNorm with affine=False cancels the conv bias exactly).
    params = precompute_resblock_params(W1, W2, H, W, C)

    # Kernel path takes NHWC (no NCHW<->NHWC transposes in the hot path).
    x_nhwc = jnp.transpose(x_nchw, (0, 2, 3, 1))
    out_nhwc = jax.block_until_ready(resnet_block_pallas_nhwc(x_nhwc, params))
    out_nchw = jnp.transpose(out_nhwc, (0, 3, 1, 2))

    ref = jax.block_until_ready(resnet_block_ref(x_nchw, W1, b1, W2, b2))
    # Tolerance reflects bf16 MXU operands for the two conv matmuls (stats and
    # all VPU math remain f32).
    np.testing.assert_allclose(np.asarray(out_nchw), np.asarray(ref),
                               rtol=5e-2, atol=5e-2)

    print("KERNEL_OK")
</pallas_src>

<mosaic_0001>
module attributes {stable_mosaic.version = 11 : i64} {
  func.func @kernel(%arg0: i32, %arg1: memref<16x128xf32, #tpu.memory_space<vmem>>, %arg2: memref<384x128xbf16, #tpu.memory_space<vmem>>, %arg3: memref<384x128xbf16, #tpu.memory_space<vmem>>, %arg4: memref<128x128xf32, #tpu.memory_space<vmem>>, %arg5: memref<16x128xf32, #tpu.memory_space<vmem>>, %arg6: memref<18x128xf32, #tpu.memory_space<vmem>>, %arg7: memref<2x128xf32, #tpu.memory_space<vmem>>) attributes {dimension_semantics = [#tpu.dimension_semantics<parallel>], iteration_bounds = array<i64: 1>, scalar_prefetch = 0 : i64, scratch_operands = 2 : i64, tpu.core_type = #tpu.core_type<tc>, window_params = [{transform_indices = @transform_0, window_bounds = array<i64: 16, 128>}, {pipeline_mode = #tpu.pipeline_mode<synchronous>, transform_indices = @transform_1, window_bounds = array<i64: 384, 128>}, {pipeline_mode = #tpu.pipeline_mode<synchronous>, transform_indices = @transform_2, window_bounds = array<i64: 384, 128>}, {pipeline_mode = #tpu.pipeline_mode<synchronous>, transform_indices = @transform_3, window_bounds = array<i64: 128, 128>}, {transform_indices = @transform_4, window_bounds = array<i64: 16, 128>}]} {
    %c0 = arith.constant 0 : index
    %c0_0 = arith.constant 0 : index
    %0 = vector.load %arg1[%c0, %c0_0] : memref<16x128xf32, #tpu.memory_space<vmem>>, vector<16x128xf32>
    %c0_1 = arith.constant 0 : index
    %c0_2 = arith.constant 0 : index
    %1 = vector.load %arg4[%c0_1, %c0_2] : memref<128x128xf32, #tpu.memory_space<vmem>>, vector<128x128xf32>
    %c1 = arith.constant 1 : index
    %c0_3 = arith.constant 0 : index
    %2 = vector.load %arg6[%c1, %c0_3] : memref<18x128xf32, #tpu.memory_space<vmem>>, vector<16x128xf32>
    tpu.vector_store %arg6[%c1, %c0_3], %0 {strides = array<i32>} : memref<18x128xf32, #tpu.memory_space<vmem>>, vector<16x128xf32>,
    %3 = vector.extract_strided_slice %0 {offsets = [1, 0], sizes = [1, 128], strides = [1, 1]} : vector<16x128xf32> to vector<1x128xf32>
    %c0_4 = arith.constant 0 : index
    %c0_5 = arith.constant 0 : index
    %4 = vector.load %arg6[%c0_4, %c0_5] : memref<18x128xf32, #tpu.memory_space<vmem>>, vector<1x128xf32>
    tpu.vector_store %arg6[%c0_4, %c0_5], %3 {strides = array<i32>} : memref<18x128xf32, #tpu.memory_space<vmem>>, vector<1x128xf32>,
    %5 = vector.extract_strided_slice %0 {offsets = [14, 0], sizes = [1, 128], strides = [1, 1]} : vector<16x128xf32> to vector<1x128xf32>
    %c17 = arith.constant 17 : index
    %c0_6 = arith.constant 0 : index
    %6 = vector.load %arg6[%c17, %c0_6] : memref<18x128xf32, #tpu.memory_space<vmem>>, vector<1x128xf32>
    tpu.vector_store %arg6[%c17, %c0_6], %5 {strides = array<i32>} : memref<18x128xf32, #tpu.memory_space<vmem>>, vector<1x128xf32>,
    %c0_7 = arith.constant 0 : index
    %c0_8 = arith.constant 0 : index
    %7 = vector.load %arg6[%c0_7, %c0_8] : memref<18x128xf32, #tpu.memory_space<vmem>>, vector<16x128xf32>
    %c1_9 = arith.constant 1 : index
    %c0_10 = arith.constant 0 : index
    %8 = vector.load %arg6[%c1_9, %c0_10] : memref<18x128xf32, #tpu.memory_space<vmem>>, vector<16x128xf32>
    %c2 = arith.constant 2 : index
    %c0_11 = arith.constant 0 : index
    %9 = vector.load %arg6[%c2, %c0_11] : memref<18x128xf32, #tpu.memory_space<vmem>>, vector<16x128xf32>
    %10 = tpu.concatenate %7, %8, %9 in 1 : vector<16x128xf32>, vector<16x128xf32>, vector<16x128xf32> -> vector<16x384xf32>
    %11 = arith.truncf %10 : vector<16x384xf32> to vector<16x384xbf16>
    %c0_12 = arith.constant 0 : index
    %c0_13 = arith.constant 0 : index
    %12 = vector.load %arg2[%c0_12, %c0_13] : memref<384x128xbf16, #tpu.memory_space<vmem>>, vector<384x128xbf16>
    %cst = arith.constant dense<0.000000e+00> : vector<16x128xf32>
    %13 = tpu.matmul %11, %12, %cst {dimension_numbers = #tpu.dot_dimension_numbers<[1], [0], [0], [1], [0, 0, 1, 1], [], []>} : vector<16x384xbf16>, vector<384x128xbf16>, vector<16x128xf32> -> vector<16x128xf32>
    %cst_14 = arith.constant dense<0.000000e+00> : vector<128xf32>
    %14 = vector.multi_reduction <add>, %13, %cst_14 [0] : vector<16x128xf32> to vector<128xf32>
    %15 = vector.shape_cast %14 : vector<128xf32> to vector<1x128xf32>
    %c0_15 = arith.constant 0 : index
    %c0_16 = arith.constant 0 : index
    %16 = vector.load %arg7[%c0_15, %c0_16] : memref<2x128xf32, #tpu.memory_space<vmem>>, vector<1x128xf32>
    tpu.vector_store %arg7[%c0_15, %c0_16], %15 {strides = array<i32>} : memref<2x128xf32, #tpu.memory_space<vmem>>, vector<1x128xf32>,
    %17 = arith.mulf %13, %13 : vector<16x128xf32>
    %cst_17 = arith.constant dense<0.000000e+00> : vector<128xf32>
    %18 = vector.multi_reduction <add>, %17, %cst_17 [0] : vector<16x128xf32> to vector<128xf32>
    %19 = vector.shape_cast %18 : vector<128xf32> to vector<1x128xf32>
    %c1_18 = arith.constant 1 : index
    %c0_19 = arith.constant 0 : index
    %20 = vector.load %arg7[%c1_18, %c0_19] : memref<2x128xf32, #tpu.memory_space<vmem>>, vector<1x128xf32>
    tpu.vector_store %arg7[%c1_18, %c0_19], %19 {strides = array<i32>} : memref<2x128xf32, #tpu.memory_space<vmem>>, vector<1x128xf32>,
    %c0_20 = arith.constant 0 : index
    %c0_21 = arith.constant 0 : index
    %21 = vector.load %arg7[%c0_20, %c0_21] : memref<2x128xf32, #tpu.memory_space<vmem>>, vector<2x128xf32>
    %cst_22 = arith.constant dense<0.000000e+00> : vector<2x128xf32>
    %22 = tpu.matmul %21, %1, %cst_22 {dimension_numbers = #tpu.dot_dimension_numbers<[1], [0], [0], [1], [0, 0, 1, 1], [], []>} : vector<2x128xf32>, vector<128x128xf32>, vector<2x128xf32> -> vector<2x128xf32>
    %23 = vector.extract_strided_slice %22 {offsets = [0, 0], sizes = [1, 128], strides = [1, 1]} : vector<2x128xf32> to vector<1x128xf32>
    %24 = vector.extract_strided_slice %22 {offsets = [1, 0], sizes = [1, 128], strides = [1, 1]} : vector<2x128xf32> to vector<1x128xf32>
    %25 = arith.mulf %23, %23 : vector<1x128xf32>
    %26 = arith.subf %24, %25 : vector<1x128xf32>
    %cst_23 = arith.constant 0.000000e+00 : f32
    %27 = vector.broadcast %cst_23 : f32 to vector<1x128xf32>
    %28 = arith.maximumf %26, %27 : vector<1x128xf32>
    %29 = vector.broadcast %23 : vector<1x128xf32> to vector<16x128xf32>
    %30 = arith.subf %13, %29 : vector<16x128xf32>
    %cst_24 = arith.constant 9.99999974E-6 : f32
    %31 = vector.broadcast %cst_24 : f32 to vector<1x128xf32>
    %32 = arith.addf %28, %31 : vector<1x128xf32>
    %33 = math.rsqrt %32 : vector<1x128xf32>
    %34 = vector.broadcast %33 : vector<1x128xf32> to vector<16x128xf32>
    %35 = arith.mulf %30, %34 : vector<16x128xf32>
    %cst_25 = arith.constant 0.000000e+00 : f32
    %36 = vector.broadcast %cst_25 : f32 to vector<16x128xf32>
    %37 = arith.maximumf %35, %36 : vector<16x128xf32>
    %c1_26 = arith.constant 1 : index
    %c0_27 = arith.constant 0 : index
    %38 = vector.load %arg6[%c1_26, %c0_27] : memref<18x128xf32, #tpu.memory_space<vmem>>, vector<16x128xf32>
    tpu.vector_store %arg6[%c1_26, %c0_27], %37 {strides = array<i32>} : memref<18x128xf32, #tpu.memory_space<vmem>>, vector<16x128xf32>,
    %39 = vector.extract_strided_slice %37 {offsets = [1, 0], sizes = [1, 128], strides = [1, 1]} : vector<16x128xf32> to vector<1x128xf32>
    %c0_28 = arith.constant 0 : index
    %c0_29 = arith.constant 0 : index
    %40 = vector.load %arg6[%c0_28, %c0_29] : memref<18x128xf32, #tpu.memory_space<vmem>>, vector<1x128xf32>
    tpu.vector_store %arg6[%c0_28, %c0_29], %39 {strides = array<i32>} : memref<18x128xf32, #tpu.memory_space<vmem>>, vector<1x128xf32>,
    %41 = vector.extract_strided_slice %37 {offsets = [14, 0], sizes = [1, 128], strides = [1, 1]} : vector<16x128xf32> to vector<1x128xf32>
    %c17_30 = arith.constant 17 : index
    %c0_31 = arith.constant 0 : index
    %42 = vector.load %arg6[%c17_30, %c0_31] : memref<18x128xf32, #tpu.memory_space<vmem>>, vector<1x128xf32>
    tpu.vector_store %arg6[%c17_30, %c0_31], %41 {strides = array<i32>} : memref<18x128xf32, #tpu.memory_space<vmem>>, vector<1x128xf32>,
    %c0_32 = arith.constant 0 : index
    %c0_33 = arith.constant 0 : index
    %43 = vector.load %arg6[%c0_32, %c0_33] : memref<18x128xf32, #tpu.memory_space<vmem>>, vector<16x128xf32>
    %c1_34 = arith.constant 1 : index
    %c0_35 = arith.constant 0 : index
    %44 = vector.load %arg6[%c1_34, %c0_35] : memref<18x128xf32, #tpu.memory_space<vmem>>, vector<16x128xf32>
    %c2_36 = arith.constant 2 : index
    %c0_37 = arith.constant 0 : index
    %45 = vector.load %arg6[%c2_36, %c0_37] : memref<18x128xf32, #tpu.memory_space<vmem>>, vector<16x128xf32>
    %46 = tpu.concatenate %43, %44, %45 in 1 : vector<16x128xf32>, vector<16x128xf32>, vector<16x128xf32> -> vector<16x384xf32>
    %47 = arith.truncf %46 : vector<16x384xf32> to vector<16x384xbf16>
    %c0_38 = arith.constant 0 : index
    %c0_39 = arith.constant 0 : index
    %48 = vector.load %arg3[%c0_38, %c0_39] : memref<384x128xbf16, #tpu.memory_space<vmem>>, vector<384x128xbf16>
    %cst_40 = arith.constant dense<0.000000e+00> : vector<16x128xf32>
    %49 = tpu.matmul %47, %48, %cst_40 {dimension_numbers = #tpu.dot_dimension_numbers<[1], [0], [0], [1], [0, 0, 1, 1], [], []>} : vector<16x384xbf16>, vector<384x128xbf16>, vector<16x128xf32> -> vector<16x128xf32>
    %cst_41 = arith.constant dense<0.000000e+00> : vector<128xf32>
    %50 = vector.multi_reduction <add>, %49, %cst_41 [0] : vector<16x128xf32> to vector<128xf32>
    %51 = vector.shape_cast %50 : vector<128xf32> to vector<1x128xf32>
    %c0_42 = arith.constant 0 : index
    %c0_43 = arith.constant 0 : index
    %52 = vector.load %arg7[%c0_42, %c0_43] : memref<2x128xf32, #tpu.memory_space<vmem>>, vector<1x128xf32>
    tpu.vector_store %arg7[%c0_42, %c0_43], %51 {strides = array<i32>} : memref<2x128xf32, #tpu.memory_space<vmem>>, vector<1x128xf32>,
    %53 = arith.mulf %49, %49 : vector<16x128xf32>
    %cst_44 = arith.constant dense<0.000000e+00> : vector<128xf32>
    %54 = vector.multi_reduction <add>, %53, %cst_44 [0] : vector<16x128xf32> to vector<128xf32>
    %55 = vector.shape_cast %54 : vector<128xf32> to vector<1x128xf32>
    %c1_45 = arith.constant 1 : index
    %c0_46 = arith.constant 0 : index
    %56 = vector.load %arg7[%c1_45, %c0_46] : memref<2x128xf32, #tpu.memory_space<vmem>>, vector<1x128xf32>
    tpu.vector_store %arg7[%c1_45, %c0_46], %55 {strides = array<i32>} : memref<2x128xf32, #tpu.memory_space<vmem>>, vector<1x128xf32>,
    %c0_47 = arith.constant 0 : index
    %c0_48 = arith.constant 0 : index
    %57 = vector.load %arg7[%c0_47, %c0_48] : memref<2x128xf32, #tpu.memory_space<vmem>>, vector<2x128xf32>
    %cst_49 = arith.constant dense<0.000000e+00> : vector<2x128xf32>
    %58 = tpu.matmul %57, %1, %cst_49 {dimension_numbers = #tpu.dot_dimension_numbers<[1], [0], [0], [1], [0, 0, 1, 1], [], []>} : vector<2x128xf32>, vector<128x128xf32>, vector<2x128xf32> -> vector<2x128xf32>
    %59 = vector.extract_strided_slice %58 {offsets = [0, 0], sizes = [1, 128], strides = [1, 1]} : vector<2x128xf32> to vector<1x128xf32>
    %60 = vector.extract_strided_slice %58 {offsets = [1, 0], sizes = [1, 128], strides = [1, 1]} : vector<2x128xf32> to vector<1x128xf32>
    %61 = arith.mulf %59, %59 : vector<1x128xf32>
    %62 = arith.subf %60, %61 : vector<1x128xf32>
    %cst_50 = arith.constant 0.000000e+00 : f32
    %63 = vector.broadcast %cst_50 : f32 to vector<1x128xf32>
    %64 = arith.maximumf %62, %63 : vector<1x128xf32>
    %65 = vector.broadcast %59 : vector<1x128xf32> to vector<16x128xf32>
    %66 = arith.subf %49, %65 : vector<16x128xf32>
    %cst_51 = arith.constant 9.99999974E-6 : f32
    %67 = vector.broadcast %cst_51 : f32 to vector<1x128xf32>
    %68 = arith.addf %64, %67 : vector<1x128xf32>
    %69 = math.rsqrt %68 : vector<1x128xf32>
    %70 = vector.broadcast %69 : vector<1x128xf32> to vector<16x128xf32>
    %71 = arith.mulf %66, %70 : vector<16x128xf32>
    %72 = arith.addf %0, %71 : vector<16x128xf32>
    %c0_52 = arith.constant 0 : index
    %c0_53 = arith.constant 0 : index
    %73 = vector.load %arg5[%c0_52, %c0_53] : memref<16x128xf32, #tpu.memory_space<vmem>>, vector<16x128xf32>
    tpu.vector_store %arg5[%c0_52, %c0_53], %72 {strides = array<i32>} : memref<16x128xf32, #tpu.memory_space<vmem>>, vector<16x128xf32>,
    return
  }
  func.func @transform_0(%arg0: i32) -> (i32, i32) {
    %c0_i32 = arith.constant 0 : i32
    %c0_i32_0 = arith.constant 0 : i32
    return %c0_i32, %arg0 : i32, i32
  }
  func.func @transform_1(%arg0: i32) -> (i32, i32) {
    %c0_i32 = arith.constant 0 : i32
    %c0_i32_0 = arith.constant 0 : i32
    %c0_i32_1 = arith.constant 0 : i32
    return %c0_i32, %c0_i32_0 : i32, i32
  }
  func.func @transform_2(%arg0: i32) -> (i32, i32) {
    %c0_i32 = arith.constant 0 : i32
    %c0_i32_0 = arith.constant 0 : i32
    %c0_i32_1 = arith.constant 0 : i32
    return %c0_i32, %c0_i32_0 : i32, i32
  }
  func.func @transform_3(%arg0: i32) -> (i32, i32) {
    %c0_i32 = arith.constant 0 : i32
    %c0_i32_0 = arith.constant 0 : i32
    %c0_i32_1 = arith.constant 0 : i32
    return %c0_i32, %c0_i32_0 : i32, i32
  }
  func.func @transform_4(%arg0: i32) -> (i32, i32) {
    %c0_i32 = arith.constant 0 : i32
    %c0_i32_0 = arith.constant 0 : i32
    return %c0_i32, %arg0 : i32, i32
  }
}

</mosaic_0001>

<bundles_post_ra>
// kernel: tpu_custom_call.1
= control target key start
LH: loop header
LB: loop body
LE: loop exit
PB: predicated region body
PF: predicated region fallthrough
CT: control target
= control target key end

     0   :  { %9 = vsyncpa [#allocation5], 0  ;;  %s1556_s0 = inlined_call_operand.hbm [shape: f32[16,128], index: 0, kind: input, shape index: {}]   ;;  %s1557_s1 = inlined_call_operand.hbm [shape: bf16[384,128], index: 1, kind: input, shape index: {}]   ;;  %s1558_s2 = inlined_call_operand.hbm [shape: bf16[384,128], index: 2, kind: input, shape index: {}]   ;;  %s1559_s3 = inlined_call_operand.hbm [shape: f32[128,128], index: 3, kind: input, shape index: {}]   ;;  %s1560_s4 = inlined_call_operand.hbm [shape: f32[16,128], index: 4, kind: output, shape index: {}]  }
   0x1   :  { %10 = vsyncpa [#allocation8], 0 }
   0x2   :  { %11 = vsyncpa [#allocation11], 0 }
   0x3   :  { %12 = vsyncpa [#allocation6], 0  ;;  %s1334_s15 = smov [#allocation7]  }
   0x4   :  { %s30_s16 = sshll.u32 %s1334_s15, 4  ;;  %s31_s16 = int_to_ptr.vmem [resolvable:$true] %s30_s16 }
   0x5   :  { %s1234_s17 = scalar_lea.vmem %s31_s16, 3072  ;;  %p1239_p1 = scmp.lt.s32.totalorder %s31_s16, %s31_s16 }
   0x6   :  { %p1235_p0 = scmp.ne.s32.totalorder %s31_s16, %s1234_s17  ;;  %p1240_p2 = scmp.lt.s32.totalorder %s1234_s17, %s1234_s17 }
   0x8   :  { %p1241_p3 = por %p1240_p2, %p1239_p1 }
   0xa   :  { %p1242_p4 = pnand %p1241_p3, %p1235_p0 }
   0xc   :  { %1245 = shalt.err (!%p1242_p4)
}
   0xd   :  { %s1335_s18 = smov 64   ;;  %s1336_s19 = smov 4  }
   0xe   :  { %36 = dma.hbm_to_vmem [thread:$0]  %s1557_s1, 3072, %s31_s16, [#allocation8], %s1335_s18, %s1335_s18, %s1336_s19  }
   0xf   :  { %s1337_s22 = smov [#allocation4]  }
  0x10   :  { %s18_s23 = sshll.u32 %s1337_s22, 4  ;;  %s19_s23 = int_to_ptr.vmem [resolvable:$true] %s18_s23 }
  0x11   :  { %s1254_s24 = scalar_lea.vmem %s19_s23, 256  ;;  %p1259_p6 = scmp.lt.s32.totalorder %s19_s23, %s19_s23 }
  0x12   :  { %p1255_p5 = scmp.ne.s32.totalorder %s19_s23, %s1254_s24  ;;  %p1260_p7 = scmp.lt.s32.totalorder %s1254_s24, %s1254_s24 }
  0x14   :  { %p1261_p8 = por %p1260_p7, %p1259_p6 }
  0x16   :  { %p1262_p9 = pnand %p1261_p8, %p1255_p5 }
  0x18   :  { %1265 = shalt.err (!%p1262_p9)
}
  0x19   :  { %s1338_s25 = smov 128   ;;  %s1339_s26 = smov 8  }
  0x1a   :  { %24 = dma.hbm_to_vmem [thread:$0]  %s1556_s0, 256, %s19_s23, [#allocation5], %s1338_s25, %s1338_s25, %s1339_s26  }
  0x1b   :  { %s1340_s1 = smov [#allocation9]   ;;  %s1341_s30 = smov [#allocation10]  }
  0x1c   :  { %s42_s29 = sshll.u32 %s1340_s1, 4  ;;  %s54_s5 = sshll.u32 %s1341_s30, 4  ;;  %s43_s29 = int_to_ptr.vmem [resolvable:$true] %s42_s29  ;;  %s55_s5 = int_to_ptr.vmem [resolvable:$true] %s54_s5 }
  0x1d   :  { %s1274_s6 = scalar_lea.vmem %s43_s29, 3072  ;;  %p1279_p11 = scmp.lt.s32.totalorder %s43_s29, %s43_s29 }
  0x1e   :  { %p1275_p10 = scmp.ne.s32.totalorder %s43_s29, %s1274_s6  ;;  %p1280_p12 = scmp.lt.s32.totalorder %s1274_s6, %s1274_s6 }
  0x20   :  { %p1281_p13 = por %p1280_p12, %p1279_p11 }
  0x22   :  { %p1282_p0 = pnand %p1281_p13, %p1275_p10 }
  0x24   :  { %1285 = shalt.err (!%p1282_p0)
}
  0x25   :  { %48 = dma.hbm_to_vmem [thread:$0]  %s1558_s2, 3072, %s43_s29, [#allocation8], %s1335_s18, %s1335_s18, %s1336_s19  }
  0x26   :  { %s1294_s0 = scalar_lea.vmem %s55_s5, 2048  ;;  %p1299_p2 = scmp.lt.s32.totalorder %s55_s5, %s55_s5 }
  0x27   :  { %p1295_p1 = scmp.ne.s32.totalorder %s55_s5, %s1294_s0  ;;  %p1300_p3 = scmp.lt.s32.totalorder %s1294_s0, %s1294_s0 }
  0x29   :  { %p1301_p4 = por %p1300_p3, %p1299_p2 }
  0x2b   :  { %p1302_p5 = pnand %p1301_p4, %p1295_p1 }
  0x2d   :  { %1305 = shalt.err (!%p1302_p5)
}
  0x2e   :  { %60 = dma.hbm_to_vmem [thread:$0]  %s1559_s3, 2048, %s55_s5, [#allocation11], %s1338_s25, %s1338_s25, %s1339_s26  }
  0x2f   :  { %1326 = dma.done.wait [#allocation5], 256  }
  0x30   :  { %1327 = vsyncadd [#allocation5], 4294967040 }
  0x31   :  { %1328 = dma.done.wait [#allocation8], 6144  }
  0x32   :  { %1329 = vsyncadd [#allocation8], 4294961152 }
  0x33   :  { %1330 = dma.done.wait [#allocation11], 2048  }
  0x34   :  { %1331 = vsyncadd [#allocation11], 4294965248  ;;  %v1342_v0 = vmov 0.0   ;;  %vm1343_vm0 = vmmov 0   ;;  %v1174_v1 = vld [vmem:[#allocation7 + $0x78] sm:$0xff]   ;;  %v1177_v4 = vld [vmem:[#allocation7 + $0x70] sm:$0xff]  }
  0x35   :  { %1053 = vmatprep.subr.bf16.mxu1 %v1342_v0  ;;  %1069 = vmatprep.mubr.msk.bf16.mxu1 %vm1343_vm0, %v1342_v0  ;;  %v1175_v2 = vld [vmem:[#allocation7 + $0xb8] sm:$0xff]   ;;  %v1178_v5 = vld [vmem:[#allocation7 + $0xb0] sm:$0xff]   ;;  %v1180_v7 = vld [vmem:[#allocation7 + $0x68] sm:$0xff]   ;;  %s1344_s2 = smov [#allocation12]  }
  0x36   :  { %957 = vmatprep.subr.bf16.mxu0 %v1174_v1  ;;  %v1176_v3 = vld [vmem:[#allocation7 + $0x38] sm:$0xff]   ;;  %1054 = vmatpush3.bf16.msra.mxu1 %v1175_v2  ;;  %v1179_v6 = vld [vmem:[#allocation7 + $0x30] sm:$0xff]   ;;  %v1181_v8 = vld [vmem:[#allocation7 + $0xa8] sm:$0xff]   ;;  %s895_s3 = sshll.u32 %s1344_s2, 4  ;;  %s896_s3 = int_to_ptr.vmem [resolvable:$true] %s895_s3 }
  0x37   :  { %958 = vmatpush3.bf16.msra.mxu0 %v1176_v3  ;;  %1055 = vmatprep.subr.bf16.mxu1 %v1342_v0  ;;  %v1182_v9 = vld [vmem:[#allocation7 + $0x28] sm:$0xff]   ;;  %v1183_v10 = vld [vmem:[#allocation7 + $0x60] sm:$0xff]   ;;  %v1186_v13 = vld [vmem:[#allocation7 + $0x58] sm:$0xff]   ;;  %s1306_s11 = scalar_lea.vmem %s896_s3, 256  ;;  %p1311_p7 = scmp.lt.s32.totalorder %s896_s3, %s896_s3 }
  0x38   :  { %959 = vmatprep.subr.bf16.mxu0 %v1177_v4  ;;  %v1184_v11 = vld [vmem:[#allocation7 + $0xa0] sm:$0xff]   ;;  %v1187_v14 = vld [vmem:[#allocation7 + $0x98] sm:$0xff]   ;;  %v1189_v16 = vld [vmem:[#allocation7 + $0x50] sm:$0xff]   ;;  %p1307_p6 = scmp.ne.s32.totalorder %s896_s3, %s1306_s11  ;;  %p1312_p8 = scmp.lt.s32.totalorder %s1306_s11, %s1306_s11 }
  0x39   :  { %v1185_v12 = vld [vmem:[#allocation7 + $0x20] sm:$0xff]   ;;  %v1188_v15 = vld [vmem:[#allocation7 + $0x18] sm:$0xff]   ;;  %v1190_v17 = vld [vmem:[#allocation7 + $0x90] sm:$0xff]  }
  0x3a   :  { %1056 = vmatpush3.bf16.msra.mxu1 %v1178_v5  ;;  %v1191_v18 = vld [vmem:[#allocation7 + $0x10] sm:$0xff]   ;;  %v1192_v19 = vld [vmem:[#allocation7 + $0x48] sm:$0xff]   ;;  %v1195_v22 = vld [vmem:[#allocation7 + $0x40] sm:$0xff]   ;;  %p1313_p9 = por %p1312_p8, %p1311_p7 }
  0x3b   :  { %960 = vmatpush3.bf16.msra.mxu0 %v1179_v6  ;;  %1057 = vmatprep.subr.bf16.mxu1 %v1342_v0  ;;  %v1193_v20 = vld [vmem:[#allocation7 + $0x88] sm:$0xff]   ;;  %v1403_v23 = vld [vmem:[#allocation4] sm:$0xff]  ;;  %v1405_v24 = vld [vmem:[#allocation4 + $0x8] sm:$0xff] }
  0x3c   :  { %961 = vmatprep.subr.bf16.mxu0 %v1180_v7  ;;  %v1194_v21 = vld [vmem:[#allocation7 + $0x8] sm:$0xff]   ;;  %v1196_v25 = vld [vmem:[#allocation7 + $0x80] sm:$0xff]   ;;  %92 = vst [vmem:[#allocation2 + $0x1] sm:$0xff] %v1403_v23  ;;  %93 = vst [vmem:[#allocation2 + $0x9] sm:$0xff] %v1405_v24  ;;  %v103_v26 = vpack.c.bf16 %v1405_v24, %v1403_v23  ;;  %p1314_p10 = pnand %p1313_p9, %p1307_p6 }
  0x3d   :  { %94 = vst [vmem:[#allocation2 - $0x1] sm:$0x2] %v1403_v23  ;;  %95 = vst [vmem:[#allocation2 + $0xb] sm:$0x40] %v1405_v24  ;;  %v1197_v27 = vld [vmem:[#allocation7] sm:$0xff]   ;;  %v1417_v34 = vld [vmem:[#allocation10 + $0x78] sm:$0xff] }
  0x3e   :  { %1058 = vmatpush3.bf16.msra.mxu1 %v1181_v8  ;;  %329 = vmatprep.mubr.bf16.mxu0 %v103_v26  ;;  %v1421_v35 = vld [vmem:[#allocation10 + $0x70] sm:$0xff]  ;;  %v1425_v36 = vld [vmem:[#allocation10 + $0x68] sm:$0xff]  ;;  %v1429_v37 = vld [vmem:[#allocation10 + $0x60] sm:$0xff] }
  0x3f   :  { %962 = vmatpush3.bf16.msra.mxu0 %v1182_v9  ;;  %1059 = vmatprep.subr.bf16.mxu1 %v1342_v0  ;;  %v1433_v38 = vld [vmem:[#allocation10 + $0x58] sm:$0xff]  ;;  %v1437_v39 = vld [vmem:[#allocation10 + $0x50] sm:$0xff]  ;;  %v1441_v40 = vld [vmem:[#allocation10 + $0x48] sm:$0xff] }
  0x40   :  { %963 = vmatprep.subr.bf16.mxu0 %v1183_v10  ;;  %v1445_v41 = vld [vmem:[#allocation10 + $0x40] sm:$0xff]  ;;  %v1449_v42 = vld [vmem:[#allocation10 + $0x38] sm:$0xff]  ;;  %v1453_v43 = vld [vmem:[#allocation10 + $0x30] sm:$0xff] }
  0x41   :  { %v1457_v44 = vld [vmem:[#allocation10 + $0x28] sm:$0xff]  ;;  %v1461_v45 = vld [vmem:[#allocation10 + $0x20] sm:$0xff]  ;;  %v1465_v46 = vld [vmem:[#allocation10 + $0x18] sm:$0xff] }
  0x42   :  { %1060 = vmatpush3.bf16.msra.mxu1 %v1184_v11  ;;  %v1467_v47 = vld [vmem:[#allocation10 + $0x10] sm:$0xff]  ;;  %v1471_v48 = vld [vmem:[#allocation10 + $0x8] sm:$0xff]  ;;  %v1475_v49 = vld [vmem:[#allocation10] sm:$0xff] }
  0x43   :  { %964 = vmatpush3.bf16.msra.mxu0 %v1185_v12  ;;  %1061 = vmatprep.subr.bf16.mxu1 %v1342_v0  ;;  %v100_v28 = vld [vmem:[#allocation2 + $0x2] sm:$0xff]  ;;  %v1206_v26 = vld [vmem:[#allocation9 + $0x28] sm:$0xff]  }
  0x44   :  { %965 = vmatprep.subr.bf16.mxu0 %v1186_v13  ;;  %v101_v29 = vld [vmem:[#allocation2 + $0xa] sm:$0xff]  ;;  %v96_v30 = vld [vmem:[#allocation2] sm:$0xff] }
  0x45   :  { %v104_v31 = vpack.c.bf16 %v101_v29, %v100_v28  ;;  %v97_v32 = vld [vmem:[#allocation2 + $0x8] sm:$0xff] }
  0x46   :  { %1062 = vmatpush3.bf16.msra.mxu1 %v1187_v14  ;;  %v102_v33 = vpack.c.bf16 %v97_v32, %v96_v30  ;;  %v1208_v28 = vld [vmem:[#allocation9 + $0xa0] sm:$0xff]   ;;  %v1210_v30 = vld [vmem:[#allocation9 + $0x58] sm:$0xff]  }
  0x47   :  { %966 = vmatpush3.bf16.msra.mxu0 %v1188_v15  ;;  %1063 = vmatprep.subr.bf16.mxu1 %v1342_v0  ;;  %v1209_v29 = vld [vmem:[#allocation9 + $0x20] sm:$0xff]   ;;  %v1212_v32 = vld [vmem:[#allocation9 + $0x18] sm:$0xff]  }
  0x48   :  { %967 = vmatprep.subr.bf16.mxu0 %v1189_v16  ;;  %v1198_v16 = vld [vmem:[#allocation9 + $0x78] sm:$0xff]  }
  0x4a   :  { %1064 = vmatpush3.bf16.msra.mxu1 %v1190_v17  ;;  %v1199_v17 = vld [vmem:[#allocation9 + $0xb8] sm:$0xff]  }
  0x4b   :  { %968 = vmatpush3.bf16.msra.mxu0 %v1191_v18  ;;  %1065 = vmatprep.subr.bf16.mxu1 %v1342_v0  ;;  %v1200_v18 = vld [vmem:[#allocation9 + $0x38] sm:$0xff]  }
  0x4c   :  { %969 = vmatprep.subr.bf16.mxu0 %v1192_v19  ;;  %v1201_v19 = vld [vmem:[#allocation9 + $0x70] sm:$0xff]  }
  0x4e   :  { %1066 = vmatpush3.bf16.msra.mxu1 %v1193_v20  ;;  %v1202_v20 = vld [vmem:[#allocation9 + $0xb0] sm:$0xff]  }
  0x4f   :  { %970 = vmatpush3.bf16.msra.mxu0 %v1194_v21  ;;  %1067 = vmatprep.subr.bf16.mxu1 %v1342_v0  ;;  %v1203_v21 = vld [vmem:[#allocation9 + $0x30] sm:$0xff]  }
  0x50   :  { %971 = vmatprep.subr.bf16.mxu0 %v1195_v22  ;;  %v1204_v22 = vld [vmem:[#allocation9 + $0x68] sm:$0xff]  }
  0x52   :  { %1068 = vmatpush3.bf16.msra.mxu1 %v1196_v25  ;;  %v1205_v25 = vld [vmem:[#allocation9 + $0xa8] sm:$0xff]  }
  0x53   :  { %972 = vmatpush3.bf16.msra.mxu0 %v1197_v27  ;;  %1005 = vmatprep.subr.bf16.mxu1 %v1198_v16  ;;  %v1207_v27 = vld [vmem:[#allocation9 + $0x60] sm:$0xff]  }
  0x54   :  { %1073 = vmatprep.subr.mxu0 %v1342_v0 }
  0x55   :  { %1070 = vmatmul.mubr.bf16.vlgmr.msra.gmra.mxu1 %v104_v31  ;;  %v1211_v31 = vld [vmem:[#allocation9 + $0x98] sm:$0xff]  }
  0x56   :  { %330 = vmatmul.mubr.bf16.vlgmr.msra.gmra.mxu0 %v102_v33  ;;  %1006 = vmatpush3.bf16.msra.mxu1 %v1200_v18  ;;  %v1213_v33 = vld [vmem:[#allocation9 + $0x50] sm:$0xff]  }
  0x57   :  { %1105 = vmatprep.mubr.msk.f32.mxu0 %vm1343_vm0, %v1342_v0  ;;  %1074 = vmatpush3.msra.mxu0 %v1417_v34 }
  0x58   :  { %1075 = vmatprep.subr.mxu0 %v1342_v0  ;;  %1007 = vmatprep.subr.bf16.mxu1 %v1201_v19 }
  0x59   :  { %1076 = vmatpush3.msra.mxu0 %v1421_v35 }
  0x5a   :  { %1077 = vmatprep.subr.mxu0 %v1342_v0  ;;  %1008 = vmatpush3.bf16.msra.mxu1 %v1203_v21 }
  0x5b   :  { %1078 = vmatpush3.msra.mxu0 %v1425_v36  ;;  %1009 = vmatprep.subr.bf16.mxu1 %v1204_v22 }
  0x5c   :  { %1079 = vmatprep.subr.mxu0 %v1342_v0 }
  0x5d   :  { %1080 = vmatpush3.msra.mxu0 %v1429_v37 }
  0x5e   :  { %1081 = vmatprep.subr.mxu0 %v1342_v0  ;;  %1010 = vmatpush3.bf16.msra.mxu1 %v1206_v26 }
  0x5f   :  { %1082 = vmatpush3.msra.mxu0 %v1433_v38  ;;  %1011 = vmatprep.subr.bf16.mxu1 %v1207_v27 }
  0x60   :  { %1083 = vmatprep.subr.mxu0 %v1342_v0 }
  0x61   :  { %1084 = vmatpush3.msra.mxu0 %v1437_v39 }
  0x62   :  { %1085 = vmatprep.subr.mxu0 %v1342_v0  ;;  %1012 = vmatpush3.bf16.msra.mxu1 %v1209_v29 }
  0x63   :  { %1086 = vmatpush3.msra.mxu0 %v1441_v40  ;;  %1013 = vmatprep.subr.bf16.mxu1 %v1210_v30 }
  0x64   :  { %1087 = vmatprep.subr.mxu0 %v1342_v0 }
  0x65   :  { %1088 = vmatpush3.msra.mxu0 %v1445_v41 }
  0x66   :  { %1089 = vmatprep.subr.mxu0 %v1342_v0  ;;  %1014 = vmatpush3.bf16.msra.mxu1 %v1212_v32 }
  0x67   :  { %1090 = vmatpush3.msra.mxu0 %v1449_v42  ;;  %1015 = vmatprep.subr.bf16.mxu1 %v1213_v33 }
  0x68   :  { %1091 = vmatprep.subr.mxu0 %v1342_v0 }
  0x69   :  { %1092 = vmatpush3.msra.mxu0 %v1453_v43 }
  0x6a   :  { %1093 = vmatprep.subr.mxu0 %v1342_v0 }
  0x6b   :  { %1094 = vmatpush3.msra.mxu0 %v1457_v44 }
  0x6c   :  { %1095 = vmatprep.subr.mxu0 %v1342_v0 }
  0x6d   :  { %1096 = vmatpush3.msra.mxu0 %v1461_v45 }
  0x6e   :  { %1097 = vmatprep.subr.mxu0 %v1342_v0 }
  0x6f   :  { %1098 = vmatpush3.msra.mxu0 %v1465_v46 }
  0x70   :  { %1099 = vmatprep.subr.mxu0 %v1342_v0 }
  0x71   :  { %1100 = vmatpush3.msra.mxu0 %v1467_v47 }
  0x72   :  { %1101 = vmatprep.subr.mxu0 %v1342_v0 }
  0x73   :  { %1102 = vmatpush3.msra.mxu0 %v1471_v48 }
  0x74   :  { %1103 = vmatprep.subr.mxu0 %v1342_v0 }
  0x75   :  { %1104 = vmatpush3.msra.mxu0 %v1475_v49 }
  0x76   :  { %1108 = vmatprep.subr.bf16.mxu0 %v1342_v0 }
 0x115   :  { %v372_v50 = vpop.f32.mrf.mxu1 }
 0x116   :  { %v973_v51 = vpop.f32.mrf.mxu0 }
 0x117   :  { %v1071_v52 = vpop.f32.mrf.mxu1 }
 0x118   :  { %v974_v53 = vpop.f32.mrf.mxu0  ;;  %v1216_v52 = vld [vmem:[#allocation9 + $0x48] sm:$0xff]  }
 0x119   :  { %v975_v54 = vadd.f32 %v974_v53, %v973_v51  ;;  %v375_v55 = vpop.f32.mrf.mxu1  ;;  %v1215_v51 = vld [vmem:[#allocation9 + $0x10] sm:$0xff]   ;;  %v1217_v53 = vld [vmem:[#allocation9 + $0x88] sm:$0xff]  }
 0x11a   :  { %v976_v56 = vpop.f32.mrf.mxu0  ;;  %1016 = vmatpush3.bf16.msra.mxu1 %v1215_v51 }
 0x11b   :  { %v1072_v57 = vpop.f32.mrf.mxu1  ;;  %v1481_v59 = vadd.f32 %v975_v54, %v372_v50  ;;  %v1214_v50 = vld [vmem:[#allocation9 + $0x90] sm:$0xff]   ;;  %v1218_v54 = vld [vmem:[#allocation9 + $0x8] sm:$0xff]   ;;  %1017 = vmatprep.subr.bf16.mxu1 %v1216_v52 }
 0x11c   :  { %v977_v58 = vpop.f32.mrf.mxu0  ;;  %v1221_v57 = vld [vmem:[#allocation9] sm:$0xff]  }
 0x11d   :  { %v978_v60 = vadd.f32 %v977_v58, %v976_v56  ;;  %v387_v62 = vmul.f32 %v1481_v59, %v1481_v59  ;;  %v1220_v56 = vld [vmem:[#allocation9 + $0x80] sm:$0xff]  }
 0x11e   :  { %1018 = vmatpush3.bf16.msra.mxu1 %v1218_v54 }
 0x11f   :  { %v1483_v61 = vadd.f32 %v978_v60, %v375_v55  ;;  %v1219_v55 = vld [vmem:[#allocation9 + $0x40] sm:$0xff]  }
 0x120   :  { %1019 = vmatprep.subr.bf16.mxu1 %v1219_v55 }
 0x121   :  { %v379_v63 = vadd.f32 %v1483_v61, %v1481_v59  ;;  %v388_v1 = vmul.f32 %v1483_v61, %v1483_v61 }
 0x122   :  { %1020 = vmatpush3.bf16.msra.mxu1 %v1221_v57 }
 0x123   :  { %v380_v2 = vrot.slane %v379_v63, 4  ;;  %v389_v3 = vadd.f32 %v388_v1, %v387_v62  ;;  %1128 = vmatprep.subr.mxu1 %v1342_v0 }
 0x125   :  { %v381_v4 = vadd.f32 %v380_v2, %v379_v63  ;;  %v390_v5 = vrot.slane %v389_v3, 4 }
 0x127   :  { %v382_v6 = vrot.slane %v381_v4, 2  ;;  %v391_v7 = vadd.f32 %v390_v5, %v389_v3  ;;  %v474_v3 = vlaneseq }
 0x129   :  { %v383_v8 = vadd.f32 %v382_v6, %v381_v4  ;;  %v392_v9 = vrot.slane %v391_v7, 2  ;;  %v1501_v5 = vshrl.u32 %v474_v3, 7 }
 0x12b   :  { %v384_v10 = vrot.slane %v383_v8, 1  ;;  %v393_v11 = vadd.f32 %v392_v9, %v391_v7  ;;  %v476_v6 = vsub.s32 0, %v1501_v5 }
 0x12d   :  { %v385_v12 = vadd.f32 %v384_v10, %v383_v8  ;;  %v394_v13 = vrot.slane %v393_v11, 1  ;;  %v484_v8 = vsub.s32 1, %v1501_v5 }
 0x12f   :  { %386 = vst [vmem:[#allocation3] sm:$0x1] %v385_v12  ;;  %v395_v14 = vadd.f32 %v394_v13, %v393_v11 }
 0x131   :  { %396 = vst [vmem:[#allocation3 + $0x1] sm:$0x1] %v395_v14 }
 0x138   :  { %v397_v15 = vld [vmem:[#allocation3] sm:$0x3] }
 0x139   :  { %1106 = vmatmul.mubr.f32.vlgmr.msra.gmra.mxu0 %v397_v15 }
 0x13a   :  { %1124 = vmatprep.mubr.msk.bf16.mxu0 %vm1343_vm0, %v1342_v0  ;;  %1109 = vmatpush3.bf16.msra.mxu0 %v1199_v17 }
 0x13b   :  { %1110 = vmatprep.subr.bf16.mxu0 %v1342_v0 }
 0x13e   :  { %1111 = vmatpush3.bf16.msra.mxu0 %v1202_v20 }
 0x13f   :  { %1112 = vmatprep.subr.bf16.mxu0 %v1342_v0 }
 0x142   :  { %1113 = vmatpush3.bf16.msra.mxu0 %v1205_v25 }
 0x143   :  { %1114 = vmatprep.subr.bf16.mxu0 %v1342_v0 }
 0x146   :  { %1115 = vmatpush3.bf16.msra.mxu0 %v1208_v28 }
 0x147   :  { %1116 = vmatprep.subr.bf16.mxu0 %v1342_v0 }
 0x14a   :  { %1117 = vmatpush3.bf16.msra.mxu0 %v1211_v31 }
 0x14b   :  { %1118 = vmatprep.subr.bf16.mxu0 %v1342_v0 }
 0x14e   :  { %1119 = vmatpush3.bf16.msra.mxu0 %v1214_v50 }
 0x14f   :  { %1120 = vmatprep.subr.bf16.mxu0 %v1342_v0 }
 0x152   :  { %1121 = vmatpush3.bf16.msra.mxu0 %v1217_v53 }
 0x153   :  { %1122 = vmatprep.subr.bf16.mxu0 %v1342_v0 }
 0x156   :  { %1123 = vmatpush3.bf16.msra.mxu0 %v1220_v56 }
 0x1f9   :  { %v464_v58 = vpop.f32.mrf.mxu0 }
 0x1fa   :  { %v468_v60 = vmul.f32 %v464_v58, %v464_v58  ;;  %v477_v7 = vrot.slane %v464_v58, %v476_v6 }
 0x1fb   :  { %v1107_v62 = vpop.f32.mrf.mxu0 }
 0x1fc   :  { %v470_v63 = vrot.slane %v468_v60, 7  ;;  %v478_v10 = vsub.f32 %v1481_v59, %v477_v7  ;;  %v479_v11 = vsub.f32 %v1483_v61, %v477_v7 }
 0x1fe   :  { %v472_v1 = vsub.f32 %v464_v58, %v470_v63 }
 0x200   :  { %v473_v2 = vmax.f32 %v472_v1, 0.0 }
 0x202   :  { %v480_v4 = vadd.f32 1e-05, %v473_v2 }
 0x204   :  { %1222 = vrsqrt.f32 %v480_v4 }
 0x211   :  { %v1223_v9 = vpop.eup %1222 }
 0x212   :  { %v485_v12 = vrot.slane %v1223_v9, %v484_v8 }
 0x214   :  { %v486_v13 = vmul.f32 %v485_v12, %v478_v10  ;;  %v487_v14 = vmul.f32 %v485_v12, %v479_v11 }
 0x216   :  { %v488_v15 = vmax.f32 %v486_v13, 0.0  ;;  %v489_v16 = vmax.f32 %v487_v14, 0.0 }
 0x218   :  { %490 = vst [vmem:[#allocation2 + $0x1] sm:$0xff] %v488_v15  ;;  %491 = vst [vmem:[#allocation2 + $0x9] sm:$0xff] %v489_v16  ;;  %v501_v17 = vpack.c.bf16 %v489_v16, %v488_v15 }
 0x219   :  { %492 = vst [vmem:[#allocation2 - $0x1] sm:$0x2] %v488_v15  ;;  %493 = vst [vmem:[#allocation2 + $0xb] sm:$0x40] %v489_v16 }
 0x21a   :  { %727 = vmatprep.mubr.bf16.mxu1 %v501_v17 }
 0x21f   :  { %v498_v18 = vld [vmem:[#allocation2 + $0x2] sm:$0xff] }
 0x220   :  { %v499_v19 = vld [vmem:[#allocation2 + $0xa] sm:$0xff]  ;;  %v494_v20 = vld [vmem:[#allocation2] sm:$0xff] }
 0x221   :  { %v502_v21 = vpack.c.bf16 %v499_v19, %v498_v18  ;;  %v495_v59 = vld [vmem:[#allocation2 + $0x8] sm:$0xff] }
 0x222   :  { %v500_v22 = vpack.c.bf16 %v495_v59, %v494_v20 }
 0x223   :  { %1125 = vmatmul.mubr.bf16.vlgmr.msra.gmra.mxu0 %v502_v21 }
 0x224   :  { %728 = vmatmul.mubr.bf16.vlgmr.msra.gmra.mxu1 %v500_v22 }
 0x225   :  { %1129 = vmatpush3.msra.mxu1 %v1417_v34  ;;  %1160 = vmatprep.mubr.msk.f32.mxu1 %vm1343_vm0, %v1342_v0 }
 0x226   :  { %1130 = vmatprep.subr.mxu1 %v1342_v0 }
 0x227   :  { %1131 = vmatpush3.msra.mxu1 %v1421_v35 }
 0x228   :  { %1132 = vmatprep.subr.mxu1 %v1342_v0 }
 0x229   :  { %1133 = vmatpush3.msra.mxu1 %v1425_v36 }
 0x22a   :  { %1134 = vmatprep.subr.mxu1 %v1342_v0 }
 0x22b   :  { %1135 = vmatpush3.msra.mxu1 %v1429_v37 }
 0x22c   :  { %1136 = vmatprep.subr.mxu1 %v1342_v0 }
 0x22d   :  { %1137 = vmatpush3.msra.mxu1 %v1433_v38 }
 0x22e   :  { %1138 = vmatprep.subr.mxu1 %v1342_v0 }
 0x22f   :  { %1139 = vmatpush3.msra.mxu1 %v1437_v39 }
 0x230   :  { %1140 = vmatprep.subr.mxu1 %v1342_v0 }
 0x231   :  { %1141 = vmatpush3.msra.mxu1 %v1441_v40 }
 0x232   :  { %1142 = vmatprep.subr.mxu1 %v1342_v0 }
 0x233   :  { %1143 = vmatpush3.msra.mxu1 %v1445_v41 }
 0x234   :  { %1144 = vmatprep.subr.mxu1 %v1342_v0 }
 0x235   :  { %1145 = vmatpush3.msra.mxu1 %v1449_v42 }
 0x236   :  { %1146 = vmatprep.subr.mxu1 %v1342_v0 }
 0x237   :  { %1147 = vmatpush3.msra.mxu1 %v1453_v43 }
 0x238   :  { %1148 = vmatprep.subr.mxu1 %v1342_v0 }
 0x239   :  { %1149 = vmatpush3.msra.mxu1 %v1457_v44 }
 0x23a   :  { %1150 = vmatprep.subr.mxu1 %v1342_v0 }
 0x23b   :  { %1151 = vmatpush3.msra.mxu1 %v1461_v45 }
 0x23c   :  { %1152 = vmatprep.subr.mxu1 %v1342_v0 }
 0x23d   :  { %1153 = vmatpush3.msra.mxu1 %v1465_v46 }
 0x23e   :  { %1154 = vmatprep.subr.mxu1 %v1342_v0 }
 0x23f   :  { %1155 = vmatpush3.msra.mxu1 %v1467_v47 }
 0x240   :  { %1156 = vmatprep.subr.mxu1 %v1342_v0 }
 0x241   :  { %1157 = vmatpush3.msra.mxu1 %v1471_v48 }
 0x242   :  { %1158 = vmatprep.subr.mxu1 %v1342_v0 }
 0x243   :  { %1159 = vmatpush3.msra.mxu1 %v1475_v49 }
 0x2e3   :  { %v770_v34 = vpop.f32.mrf.mxu0 }
 0x2e4   :  { %v1021_v35 = vpop.f32.mrf.mxu1 }
 0x2e5   :  { %v1126_v36 = vpop.f32.mrf.mxu0 }
 0x2e6   :  { %v1022_v37 = vpop.f32.mrf.mxu1 }
 0x2e7   :  { %v1023_v38 = vadd.f32 %v1022_v37, %v1021_v35  ;;  %v773_v39 = vpop.f32.mrf.mxu0 }
 0x2e8   :  { %v1024_v40 = vpop.f32.mrf.mxu1 }
 0x2e9   :  { %v1127_v41 = vpop.f32.mrf.mxu0  ;;  %v771_v43 = vadd.f32 %v1023_v38, %v770_v34 }
 0x2ea   :  { %v1025_v42 = vpop.f32.mrf.mxu1 }
 0x2eb   :  { %v1026_v44 = vadd.f32 %v1025_v42, %v1024_v40  ;;  %v785_v46 = vmul.f32 %v771_v43, %v771_v43 }
 0x2ed   :  { %v774_v45 = vadd.f32 %v1026_v44, %v773_v39 }
 0x2ef   :  { %v777_v47 = vadd.f32 %v774_v45, %v771_v43  ;;  %v786_v61 = vmul.f32 %v774_v45, %v774_v45 }
 0x2f1   :  { %v778_v48 = vrot.slane %v777_v47, 4  ;;  %v787_v25 = vadd.f32 %v786_v61, %v785_v46 }
 0x2f3   :  { %v779_v0 = vadd.f32 %v778_v48, %v777_v47  ;;  %v788_v26 = vrot.slane %v787_v25, 4 }
 0x2f5   :  { %v780_v49 = vrot.slane %v779_v0, 2  ;;  %v789_v27 = vadd.f32 %v788_v26, %v787_v25 }
 0x2f7   :  { %v781_v28 = vadd.f32 %v780_v49, %v779_v0  ;;  %v790_v29 = vrot.slane %v789_v27, 2 }
 0x2f9   :  { %v782_v30 = vrot.slane %v781_v28, 1  ;;  %v791_v31 = vadd.f32 %v790_v29, %v789_v27 }
 0x2fb   :  { %v783_v32 = vadd.f32 %v782_v30, %v781_v28  ;;  %v792_v33 = vrot.slane %v791_v31, 1 }
 0x2fd   :  { %784 = vst [vmem:[#allocation3] sm:$0x1] %v783_v32  ;;  %v793_v50 = vadd.f32 %v792_v33, %v791_v31 }
 0x2ff   :  { %794 = vst [vmem:[#allocation3 + $0x1] sm:$0x1] %v793_v50 }
 0x306   :  { %v795_v51 = vld [vmem:[#allocation3] sm:$0x3] }
 0x307   :  { %1161 = vmatmul.mubr.f32.vlgmr.msra.gmra.mxu1 %v795_v51 }
 0x3c7   :  { %v862_v52 = vpop.f32.mrf.mxu1 }
 0x3c8   :  { %v866_v53 = vmul.f32 %v862_v52, %v862_v52  ;;  %v875_v60 = vrot.slane %v862_v52, %v476_v6 }
 0x3c9   :  { %v1162_v54 = vpop.f32.mrf.mxu1 }
 0x3ca   :  { %v868_v55 = vrot.slane %v866_v53, 7  ;;  %v876_v63 = vsub.f32 %v771_v43, %v875_v60  ;;  %v877_v1 = vsub.f32 %v774_v45, %v875_v60 }
 0x3cc   :  { %v870_v56 = vsub.f32 %v862_v52, %v868_v55 }
 0x3ce   :  { %v871_v57 = vmax.f32 %v870_v56, 0.0 }
 0x3d0   :  { %v878_v58 = vadd.f32 1e-05, %v871_v57 }
 0x3d2   :  { %1224 = vrsqrt.f32 %v878_v58 }
 0x3df   :  { %v1225_v62 = vpop.eup %1224 }
 0x3e0   :  { %v883_v2 = vrot.slane %v1225_v62, %v484_v8 }
 0x3e2   :  { %v884_v3 = vmul.f32 %v883_v2, %v876_v63  ;;  %v885_v4 = vmul.f32 %v883_v2, %v877_v1 }
 0x3e4   :  { %v886_v7 = vadd.f32 %v884_v3, %v1403_v23  ;;  %v887_v9 = vadd.f32 %v885_v4, %v1405_v24 }
 0x3e6   :  { %888 = vst [vmem:[#allocation12] sm:$0xff] %v886_v7  ;;  %889 = vst [vmem:[#allocation12 + $0x8] sm:$0xff] %v887_v9 }
 0x3e7   :  { %1317 = shalt.err (!%p1314_p10)
}
 0x3e8   :  { %901 = dma.vmem_to_hbm [thread:$0]  %s896_s3, 256, %s1560_s4, [#allocation6], %s1338_s25, %s1338_s25, %s1339_s26  }
 0x3e9   :  { %1332 = dma.done.wait [#allocation6], 256  }
 0x3ea   :  { %1333 = vsyncadd [#allocation6], 4294967040 }
 0x3eb   :  { %905 = vsyncpa [#allocation5], 1 }
 0x3ec   :  { %906 = vsyncpa [#allocation8], 1 }
 0x3ed   :  { %907 = vsyncpa [#allocation11], 1 }
 0x3ee   :  { %908 = vsyncpa [#allocation6], 1 }

</bundles_post_ra>
